<compile_context>
chip_gen: v5e
topology: v5e:2x2
jax: 0.10.0
libtpu: 0.0.40
codegen_flags: <defaults>
</compile_context>

<pallas_src>
import jax
import jax.numpy as jnp
from jax.experimental import pallas as pl
from jax.experimental.pallas import tpu as pltpu


def _round_up(n, m):
    return ((n + m - 1) // m) * m


def simplenet_kernel(x_ref, w1_ref, b1_ref, w2_ref, b2_ref, o_ref):
    # fc1: cast x f32 -> bf16 in-registers, (TB,512)bf16 @ (512,256)bf16 -> f32 acc.
    x = x_ref[...].astype(jnp.bfloat16)
    h = jnp.dot(x, w1_ref[...], preferred_element_type=jnp.float32)
    h = jnp.maximum(h + b1_ref[...], 0.0)                  # bias + ReLU in f32
    # fc2 in f32: (TB,256)f32 @ (256,128)f32 (output padded to 128 lanes).
    out = jnp.dot(h, w2_ref[...], preferred_element_type=jnp.float32)
    o_ref[...] = (out + b2_ref[...]).astype(o_ref.dtype)   # lane-dense bf16 store


def prepare_params(w1, b1, w2, b2, *, n_pad=128):
    """One-time conversion of weights to the kernel's layout.  Call once, reuse
    across forward calls.  w1:(512,256), b1:(256,), w2:(256,10), b2:(10,) in
    (in, out) layout (transposed vs. PyTorch storage)."""
    K, H = w1.shape
    N = w2.shape[1]
    w1_bf = w1.astype(jnp.bfloat16)
    b1_2d = b1.reshape(1, H).astype(jnp.float32)
    w2_pad = jnp.zeros((H, n_pad), jnp.float32).at[:, :N].set(w2.astype(jnp.float32))
    b2_pad = jnp.zeros((1, n_pad), jnp.float32).at[:, :N].set(b2.astype(jnp.float32))
    return (w1_bf, b1_2d, w2_pad, b2_pad, N)


def simplenet_forward(x, prepared, *, tb_max=2048):
    """x: (B, 512) f32.  prepared: output of prepare_params().  Returns (B, 10) f32."""
    w1_bf, b1_2d, w2_pad, b2_pad, n_out = prepared
    B, K = x.shape
    H = w1_bf.shape[1]          # 256
    N_PAD = w2_pad.shape[1]     # 128 (lane-dense output width)

    # Batch tile: multiple of 16 (covers f32 input and bf16 output sublane tiling),
    # aimed at ceil(B/2) so the grid has >= 2 steps for v7x's two TensorCores,
    # capped at tb_max (VMEM stays well under the default scoped limit).
    TB = max(16, min((tb_max // 16) * 16, _round_up(pl.cdiv(B, 2), 16)))
    grid = (pl.cdiv(B, TB),)    # ragged final block handled by Pallas masking

    flops = 2 * B * (K * H + H * N_PAD)
    bytes_accessed = (B * K * 4 + B * N_PAD * 2          # x read (f32), out write (bf16)
                      + K * H * 2 + H * 4                # w1 (bf16), b1 (f32)
                      + H * N_PAD * 4 + N_PAD * 4)       # w2 pad (f32), b2 pad (f32)

    out = pl.pallas_call(
        simplenet_kernel,
        out_shape=jax.ShapeDtypeStruct((B, N_PAD), jnp.bfloat16),
        grid=grid,
        in_specs=[
            pl.BlockSpec((TB, K), lambda i: (i, 0)),       # x tile moves with batch
            pl.BlockSpec((K, H), lambda i: (0, 0)),        # w1 resident
            pl.BlockSpec((1, H), lambda i: (0, 0)),        # b1 resident
            pl.BlockSpec((H, N_PAD), lambda i: (0, 0)),    # w2 (padded) resident
            pl.BlockSpec((1, N_PAD), lambda i: (0, 0)),    # b2 (padded) resident
        ],
        out_specs=pl.BlockSpec((TB, N_PAD), lambda i: (i, 0)),
        compiler_params=pltpu.CompilerParams(
            dimension_semantics=("parallel",)),
        cost_estimate=pl.CostEstimate(
            flops=flops, transcendentals=0, bytes_accessed=bytes_accessed),
    )(x, w1_bf, b1_2d, w2_pad, b2_pad)

    return out[:, :n_out].astype(jnp.float32)


def init_params(key):
    """Deterministic init matching PyTorch nn.Linear defaults; weights in the
    (in, out) layout the kernel consumes."""
    k1, k2, k3, k4 = jax.random.split(key, 4)
    in1, out1 = 512, 256
    in2, out2 = 256, 10
    bound1 = 1.0 / jnp.sqrt(in1)
    bound2 = 1.0 / jnp.sqrt(in2)
    w1 = jax.random.uniform(k1, (in1, out1), jnp.float32, -bound1, bound1)
    b1 = jax.random.uniform(k2, (out1,), jnp.float32, -bound1, bound1)
    w2 = jax.random.uniform(k3, (in2, out2), jnp.float32, -bound2, bound2)
    b2 = jax.random.uniform(k4, (out2,), jnp.float32, -bound2, bound2)
    return w1, b1, w2, b2


if __name__ == "__main__":
    key = jax.random.PRNGKey(0)
    kx1, kx2, kp = jax.random.split(key, 3)
    w1, b1, w2, b2 = init_params(kp)
    prepared = prepare_params(w1, b1, w2, b2)

    def ref(x):
        # Plain-JAX f32 reference (same math as the PyTorch forward).
        return jnp.maximum(x @ w1 + b1, 0.0) @ w2 + b2

    # 1) Small batch: single (partial) grid step.
    x1 = jax.random.normal(kx1, (8, 512), jnp.float32)
    y1 = simplenet_forward(x1, prepared)
    jax.block_until_ready(y1)
    assert y1.shape == (8, 10)
    assert jnp.allclose(y1, ref(x1), atol=2e-2, rtol=2e-2), float(
        jnp.max(jnp.abs(y1 - ref(x1))))

    # 2) Multiple grid steps with a ragged final block (B not a multiple of TB).
    x2 = jax.random.normal(kx2, (300, 512), jnp.float32)
    y2 = simplenet_forward(x2, prepared, tb_max=128)   # TB=128 -> grid=3, last block ragged
    jax.block_until_ready(y2)
    assert y2.shape == (300, 10)
    assert jnp.allclose(y2, ref(x2), atol=2e-2, rtol=2e-2), float(
        jnp.max(jnp.abs(y2 - ref(x2))))

    print("KERNEL_OK")
</pallas_src>

<mosaic_0001>
module attributes {stable_mosaic.version = 11 : i64} {
  func.func @simplenet_kernel(%arg0: i32, %arg1: memref<16x512xf32, #tpu.memory_space<vmem>>, %arg2: memref<512x256xbf16, #tpu.memory_space<vmem>>, %arg3: memref<1x256xf32, #tpu.memory_space<vmem>>, %arg4: memref<256x128xf32, #tpu.memory_space<vmem>>, %arg5: memref<1x128xf32, #tpu.memory_space<vmem>>, %arg6: memref<16x128xbf16, #tpu.memory_space<vmem>>) attributes {dimension_semantics = [#tpu.dimension_semantics<parallel>], iteration_bounds = array<i64: 1>, scalar_prefetch = 0 : i64, scratch_operands = 0 : i64, tpu.core_type = #tpu.core_type<tc>, window_params = [{transform_indices = @transform_0, window_bounds = array<i64: 16, 512>}, {pipeline_mode = #tpu.pipeline_mode<synchronous>, transform_indices = @transform_1, window_bounds = array<i64: 512, 256>}, {pipeline_mode = #tpu.pipeline_mode<synchronous>, transform_indices = @transform_2, window_bounds = array<i64: 1, 256>}, {pipeline_mode = #tpu.pipeline_mode<synchronous>, transform_indices = @transform_3, window_bounds = array<i64: 256, 128>}, {pipeline_mode = #tpu.pipeline_mode<synchronous>, transform_indices = @transform_4, window_bounds = array<i64: 1, 128>}, {transform_indices = @transform_5, window_bounds = array<i64: 16, 128>}]} {
    %c0 = arith.constant 0 : index
    %c0_0 = arith.constant 0 : index
    %0 = vector.load %arg1[%c0, %c0_0] : memref<16x512xf32, #tpu.memory_space<vmem>>, vector<16x512xf32>
    %1 = arith.truncf %0 : vector<16x512xf32> to vector<16x512xbf16>
    %c0_1 = arith.constant 0 : index
    %c0_2 = arith.constant 0 : index
    %2 = vector.load %arg2[%c0_1, %c0_2] : memref<512x256xbf16, #tpu.memory_space<vmem>>, vector<512x256xbf16>
    %cst = arith.constant dense<0.000000e+00> : vector<16x256xf32>
    %3 = tpu.matmul %1, %2, %cst {dimension_numbers = #tpu.dot_dimension_numbers<[1], [0], [0], [1], [0, 0, 1, 1], [], []>} : vector<16x512xbf16>, vector<512x256xbf16>, vector<16x256xf32> -> vector<16x256xf32>
    %c0_3 = arith.constant 0 : index
    %c0_4 = arith.constant 0 : index
    %4 = vector.load %arg3[%c0_3, %c0_4] : memref<1x256xf32, #tpu.memory_space<vmem>>, vector<1x256xf32>
    %5 = vector.broadcast %4 : vector<1x256xf32> to vector<16x256xf32>
    %6 = arith.addf %3, %5 : vector<16x256xf32>
    %cst_5 = arith.constant 0.000000e+00 : f32
    %7 = vector.broadcast %cst_5 : f32 to vector<16x256xf32>
    %8 = arith.maximumf %6, %7 : vector<16x256xf32>
    %c0_6 = arith.constant 0 : index
    %c0_7 = arith.constant 0 : index
    %9 = vector.load %arg4[%c0_6, %c0_7] : memref<256x128xf32, #tpu.memory_space<vmem>>, vector<256x128xf32>
    %cst_8 = arith.constant dense<0.000000e+00> : vector<16x128xf32>
    %10 = tpu.matmul %8, %9, %cst_8 {dimension_numbers = #tpu.dot_dimension_numbers<[1], [0], [0], [1], [0, 0, 1, 1], [], []>} : vector<16x256xf32>, vector<256x128xf32>, vector<16x128xf32> -> vector<16x128xf32>
    %c0_9 = arith.constant 0 : index
    %c0_10 = arith.constant 0 : index
    %11 = vector.load %arg5[%c0_9, %c0_10] : memref<1x128xf32, #tpu.memory_space<vmem>>, vector<1x128xf32>
    %12 = vector.broadcast %11 : vector<1x128xf32> to vector<16x128xf32>
    %13 = arith.addf %10, %12 : vector<16x128xf32>
    %14 = arith.truncf %13 : vector<16x128xf32> to vector<16x128xbf16>
    %c0_11 = arith.constant 0 : index
    %c0_12 = arith.constant 0 : index
    %15 = vector.load %arg6[%c0_11, %c0_12] : memref<16x128xbf16, #tpu.memory_space<vmem>>, vector<16x128xbf16>
    tpu.vector_store %arg6[%c0_11, %c0_12], %14 {strides = array<i32>} : memref<16x128xbf16, #tpu.memory_space<vmem>>, vector<16x128xbf16>,
    return
  }
  func.func @transform_0(%arg0: i32) -> (i32, i32) {
    %c0_i32 = arith.constant 0 : i32
    %c0_i32_0 = arith.constant 0 : i32
    return %arg0, %c0_i32 : i32, i32
  }
  func.func @transform_1(%arg0: i32) -> (i32, i32) {
    %c0_i32 = arith.constant 0 : i32
    %c0_i32_0 = arith.constant 0 : i32
    %c0_i32_1 = arith.constant 0 : i32
    return %c0_i32, %c0_i32_0 : i32, i32
  }
  func.func @transform_2(%arg0: i32) -> (i32, i32) {
    %c0_i32 = arith.constant 0 : i32
    %c0_i32_0 = arith.constant 0 : i32
    %c0_i32_1 = arith.constant 0 : i32
    return %c0_i32, %c0_i32_0 : i32, i32
  }
  func.func @transform_3(%arg0: i32) -> (i32, i32) {
    %c0_i32 = arith.constant 0 : i32
    %c0_i32_0 = arith.constant 0 : i32
    %c0_i32_1 = arith.constant 0 : i32
    return %c0_i32, %c0_i32_0 : i32, i32
  }
  func.func @transform_4(%arg0: i32) -> (i32, i32) {
    %c0_i32 = arith.constant 0 : i32
    %c0_i32_0 = arith.constant 0 : i32
    %c0_i32_1 = arith.constant 0 : i32
    return %c0_i32, %c0_i32_0 : i32, i32
  }
  func.func @transform_5(%arg0: i32) -> (i32, i32) {
    %c0_i32 = arith.constant 0 : i32
    %c0_i32_0 = arith.constant 0 : i32
    return %arg0, %c0_i32 : i32, i32
  }
}

</mosaic_0001>

<bundles_post_ra>
// kernel: tpu_custom_call.1
= control target key start
LH: loop header
LB: loop body
LE: loop exit
PB: predicated region body
PF: predicated region fallthrough
CT: control target
= control target key end

     0   :  { %10 = vsyncpa [#allocation3], 0  ;;  %s1279_s0 = inlined_call_operand.hbm [shape: f32[8,512], index: 0, kind: input, shape index: {}]   ;;  %s1280_s1 = inlined_call_operand.hbm [shape: bf16[512,256], index: 1, kind: input, shape index: {}]   ;;  %s1281_s2 = inlined_call_operand.hbm [shape: f32[1,256], index: 2, kind: input, shape index: {}]   ;;  %s1282_s3 = inlined_call_operand.hbm [shape: f32[256,128], index: 3, kind: input, shape index: {}]   ;;  %s1283_s4 = inlined_call_operand.vmem [shape: f32[1,128], index: 4, kind: input, shape index: {}]   ;;  %s1284_s5 = inlined_call_operand.hbm [shape: bf16[8,128], index: 5, kind: output, shape index: {}]  }
   0x1   :  { %11 = vsyncpa [#allocation6], 0 }
   0x2   :  { %12 = vsyncpa [#allocation9], 0 }
   0x3   :  { %13 = vsyncpa [#allocation4], 0  ;;  %s31_s20 = sshll.u32 %s1280_s1, 4  ;;  %s32_s20 = int_to_ptr.hbm [resolvable:$true] %s31_s20 }
   0x4   :  { %17 = vsyncadd [#allocation3], 512  ;;  %s1204_s21 = smov [#allocation5]   ;;  %s18_s25 = sshll.u32 %s1279_s0, 4  ;;  %s19_s25 = int_to_ptr.hbm [resolvable:$true] %s18_s25 }
   0x5   :  { %s33_s22 = sshll.u32 %s1204_s21, 4  ;;  %s1205_s26 = smov 128   ;;  %s34_s22 = int_to_ptr.vmem [resolvable:$true] %s33_s22 }
   0x6   :  { %s1206_s27 = smov 8   ;;  %s1207_s28 = smov [#allocation2]  }
   0x7   :  { %39 = dma.hbm_to_vmem [thread:$0]  %s32_s20, 8192, %s34_s22, [#allocation6], %s1205_s26, %s1205_s26, %s1206_s27  }
   0x8   :  { %s20_s29 = sshll.u32 %s1207_s28, 4  ;;  %s1208_s30 = smov 512   ;;  %s21_s29 = int_to_ptr.vmem [resolvable:$true] %s20_s29 }
   0x9   :  { %s1209_s6 = smov 32   ;;  %s45_s8 = sshll.u32 %s1281_s2, 4  ;;  %s46_s8 = int_to_ptr.hbm [resolvable:$true] %s45_s8 }
   0xa   :  { %26 = dma.hbm_to_vmem [thread:$0]  %s19_s25, 512, %s21_s29, [#allocation3], %s1208_s30, %s1208_s30, %s1209_s6  }
   0xb   :  { %s1210_s9 = smov [#allocation7]   ;;  %s55_s12 = sshll.u32 %s1282_s3, 4  ;;  %s56_s12 = int_to_ptr.hbm [resolvable:$true] %s55_s12 }
   0xc   :  { %s47_s10 = sshll.u32 %s1210_s9, 4  ;;  %s1211_s13 = smov [#allocation8]   ;;  %s48_s10 = int_to_ptr.vmem [resolvable:$true] %s47_s10 }
   0xd   :  { %50 = dma.hbm_to_vmem [thread:$0]  %s46_s8, 32, %s48_s10, [#allocation6]  }
   0xe   :  { %s57_s14 = sshll.u32 %s1211_s13, 4  ;;  %s58_s14 = int_to_ptr.vmem [resolvable:$true] %s57_s14 }
   0xf   :  { %63 = dma.hbm_to_vmem [thread:$0]  %s56_s12, 4096, %s58_s14, [#allocation9], %s1205_s26, %s1205_s26, %s1206_s27  }
  0x10   :  { %1196 = dma.done.wait [#allocation3], 1024  }
  0x11   :  { %1197 = vsyncadd [#allocation3], 4294966272 }
  0x12   :  { %1198 = dma.done.wait [#allocation6], 8224  }
  0x13   :  { %1199 = vsyncadd [#allocation6], 4294959072 }
  0x14   :  { %1200 = dma.done.wait [#allocation9], 4096  }
  0x15   :  { %1201 = vsyncadd [#allocation9], 4294963200  ;;  %v765_v0 = vld [vmem:[#allocation5 + $0x70] sm:$0xf]  ;;  %v978_v1 = vld [vmem:[#allocation5 + $0x74] sm:$0xf0] }
  0x16   :  { %v829_v2 = vld [vmem:[#allocation5 + $0xf0] sm:$0xf]  ;;  %v766_v3 = vor.u32 %v978_v1, %v765_v0  ;;  %v994_v4 = vld [vmem:[#allocation5 + $0xf4] sm:$0xf0]  ;;  %v757_v11 = vld [vmem:[#allocation5 + $0x60] sm:$0xf] }
  0x17   :  { %v893_v5 = vld [vmem:[#allocation5 + $0x170] sm:$0xf]  ;;  %v1010_v6 = vld [vmem:[#allocation5 + $0x174] sm:$0xf0]  ;;  %v830_v7 = vor.u32 %v994_v4, %v829_v2  ;;  %v976_v13 = vld [vmem:[#allocation5 + $0x64] sm:$0xf0] }
  0x18   :  { %v894_v8 = vor.u32 %v1010_v6, %v893_v5  ;;  %v957_v9 = vld [vmem:[#allocation5 + $0x1f0] sm:$0xf]  ;;  %v1026_v10 = vld [vmem:[#allocation5 + $0x1f4] sm:$0xf0]  ;;  %484 = vmatpush.bf16.msra.mxu0 %v766_v3  ;;  %v821_v14 = vld [vmem:[#allocation5 + $0xe0] sm:$0xf]  ;;  %v758_v16 = vor.u32 %v976_v13, %v757_v11 }
  0x19   :  { %v958_v12 = vor.u32 %v1026_v10, %v957_v9  ;;  %v992_v15 = vld [vmem:[#allocation5 + $0xe4] sm:$0xf0]  ;;  %498 = vmatpush.bf16.msra.mxu1 %v830_v7  ;;  %v885_v18 = vld [vmem:[#allocation5 + $0x160] sm:$0xf]  ;;  %v749_v23 = vld [vmem:[#allocation5 + $0x50] sm:$0xf] }
  0x1a   :  { %512 = vmatpush.bf16.msra.mxu2 %v894_v8  ;;  %v822_v17 = vor.u32 %v992_v15, %v821_v14  ;;  %v1008_v19 = vld [vmem:[#allocation5 + $0x164] sm:$0xf0]  ;;  %v949_v20 = vld [vmem:[#allocation5 + $0x1e0] sm:$0xf]  ;;  %v974_v24 = vld [vmem:[#allocation5 + $0x54] sm:$0xf0] }
  0x1b   :  { %526 = vmatpush.bf16.msra.mxu3 %v958_v12  ;;  %v886_v21 = vor.u32 %v1008_v19, %v885_v18  ;;  %v1024_v22 = vld [vmem:[#allocation5 + $0x1e4] sm:$0xf0]  ;;  %v813_v26 = vld [vmem:[#allocation5 + $0xd0] sm:$0xf]  ;;  %v990_v27 = vld [vmem:[#allocation5 + $0xd4] sm:$0xf0]  ;;  %v750_v29 = vor.u32 %v974_v24, %v749_v23 }
  0x1c   :  { %v950_v25 = vor.u32 %v1024_v22, %v949_v20  ;;  %v877_v28 = vld [vmem:[#allocation5 + $0x150] sm:$0xf]  ;;  %485 = vmatpush.bf16.msra.mxu0 %v758_v16  ;;  %v1006_v30 = vld [vmem:[#allocation5 + $0x154] sm:$0xf0]  ;;  %v814_v33 = vor.u32 %v990_v27, %v813_v26  ;;  %v741_v35 = vld [vmem:[#allocation5 + $0x40] sm:$0xf] }
  0x1d   :  { %v941_v31 = vld [vmem:[#allocation5 + $0x1d0] sm:$0xf]  ;;  %v1022_v32 = vld [vmem:[#allocation5 + $0x1d4] sm:$0xf0]  ;;  %499 = vmatpush.bf16.msra.mxu1 %v822_v17  ;;  %v878_v34 = vor.u32 %v1006_v30, %v877_v28  ;;  %v972_v36 = vld [vmem:[#allocation5 + $0x44] sm:$0xf0] }
  0x1e   :  { %513 = vmatpush.bf16.msra.mxu2 %v886_v21  ;;  %v805_v37 = vld [vmem:[#allocation5 + $0xc0] sm:$0xf]  ;;  %v942_v38 = vor.u32 %v1022_v32, %v941_v31  ;;  %v988_v39 = vld [vmem:[#allocation5 + $0xc4] sm:$0xf0]  ;;  %v742_v44 = vor.u32 %v972_v36, %v741_v35  ;;  %v733_v47 = vld [vmem:[#allocation5 + $0x30] sm:$0xf] }
  0x1f   :  { %527 = vmatpush.bf16.msra.mxu3 %v950_v25  ;;  %v869_v40 = vld [vmem:[#allocation5 + $0x140] sm:$0xf]  ;;  %v1004_v41 = vld [vmem:[#allocation5 + $0x144] sm:$0xf0]  ;;  %v806_v45 = vor.u32 %v988_v39, %v805_v37  ;;  %v970_v48 = vld [vmem:[#allocation5 + $0x34] sm:$0xf0] }
  0x20   :  { %v933_v42 = vld [vmem:[#allocation5 + $0x1c0] sm:$0xf]  ;;  %v1020_v43 = vld [vmem:[#allocation5 + $0x1c4] sm:$0xf0]  ;;  %486 = vmatpush.bf16.msra.mxu0 %v750_v29  ;;  %v870_v46 = vor.u32 %v1004_v41, %v869_v40  ;;  %v797_v49 = vld [vmem:[#allocation5 + $0xb0] sm:$0xf]  ;;  %v734_v56 = vor.u32 %v970_v48, %v733_v47 }
  0x21   :  { %500 = vmatpush.bf16.msra.mxu1 %v814_v33  ;;  %v934_v50 = vor.u32 %v1020_v43, %v933_v42  ;;  %v986_v51 = vld [vmem:[#allocation5 + $0xb4] sm:$0xf0]  ;;  %v861_v52 = vld [vmem:[#allocation5 + $0x130] sm:$0xf]  ;;  %v725_v59 = vld [vmem:[#allocation5 + $0x20] sm:$0xf] }
  0x22   :  { %514 = vmatpush.bf16.msra.mxu2 %v878_v34  ;;  %v1002_v53 = vld [vmem:[#allocation5 + $0x134] sm:$0xf0]  ;;  %v925_v54 = vld [vmem:[#allocation5 + $0x1b0] sm:$0xf]  ;;  %v798_v57 = vor.u32 %v986_v51, %v797_v49  ;;  %v968_v60 = vld [vmem:[#allocation5 + $0x24] sm:$0xf0] }
  0x23   :  { %528 = vmatpush.bf16.msra.mxu3 %v942_v38  ;;  %v1018_v55 = vld [vmem:[#allocation5 + $0x1b4] sm:$0xf0]  ;;  %v862_v58 = vor.u32 %v1002_v53, %v861_v52  ;;  %v789_v61 = vld [vmem:[#allocation5 + $0xa0] sm:$0xf]  ;;  %v984_v63 = vld [vmem:[#allocation5 + $0xa4] sm:$0xf0]  ;;  %v726_v4 = vor.u32 %v968_v60, %v725_v59 }
  0x24   :  { %487 = vmatpush.bf16.msra.mxu0 %v742_v44  ;;  %v926_v62 = vor.u32 %v1018_v55, %v925_v54  ;;  %v853_v0 = vld [vmem:[#allocation5 + $0x120] sm:$0xf]  ;;  %v1000_v1 = vld [vmem:[#allocation5 + $0x124] sm:$0xf0]  ;;  %v790_v5 = vor.u32 %v984_v63, %v789_v61  ;;  %v717_v7 = vld [vmem:[#allocation5 + $0x10] sm:$0xf] }
  0x25   :  { %501 = vmatpush.bf16.msra.mxu1 %v806_v45  ;;  %v917_v2 = vld [vmem:[#allocation5 + $0x1a0] sm:$0xf]  ;;  %v1016_v3 = vld [vmem:[#allocation5 + $0x1a4] sm:$0xf0]  ;;  %v854_v6 = vor.u32 %v1000_v1, %v853_v0  ;;  %v966_v8 = vld [vmem:[#allocation5 + $0x14] sm:$0xf0] }
  0x26   :  { %515 = vmatpush.bf16.msra.mxu2 %v870_v46  ;;  %v781_v9 = vld [vmem:[#allocation5 + $0x90] sm:$0xf]  ;;  %v918_v10 = vor.u32 %v1016_v3, %v917_v2  ;;  %v982_v11 = vld [vmem:[#allocation5 + $0x94] sm:$0xf0]  ;;  %v709_v16 = vld [vmem:[#allocation5] sm:$0xf]  ;;  %v718_v17 = vor.u32 %v966_v8, %v717_v7 }
  0x27   :  { %529 = vmatpush.bf16.msra.mxu3 %v934_v50  ;;  %v845_v12 = vld [vmem:[#allocation5 + $0x110] sm:$0xf]  ;;  %v998_v13 = vld [vmem:[#allocation5 + $0x114] sm:$0xf0]  ;;  %v964_v18 = vld [vmem:[#allocation5 + $0x4] sm:$0xf0]  ;;  %v782_v21 = vor.u32 %v982_v11, %v781_v9 }
  0x28   :  { %488 = vmatpush.bf16.msra.mxu0 %v734_v56  ;;  %v909_v14 = vld [vmem:[#allocation5 + $0x190] sm:$0xf]  ;;  %v1014_v15 = vld [vmem:[#allocation5 + $0x194] sm:$0xf0]  ;;  %v773_v19 = vld [vmem:[#allocation5 + $0x80] sm:$0xf]  ;;  %v846_v22 = vor.u32 %v998_v13, %v845_v12  ;;  %v710_v33 = vor.u32 %v964_v18, %v709_v16 }
  0x29   :  { %502 = vmatpush.bf16.msra.mxu1 %v798_v57  ;;  %v980_v20 = vld [vmem:[#allocation5 + $0x84] sm:$0xf0]  ;;  %v837_v23 = vld [vmem:[#allocation5 + $0x100] sm:$0xf]  ;;  %v910_v26 = vor.u32 %v1014_v15, %v909_v14  ;;  %v977_v28 = vld [vmem:[#allocation5 + $0x74] sm:$0xf] }
  0x2a   :  { %516 = vmatpush.bf16.msra.mxu2 %v862_v58  ;;  %v996_v24 = vld [vmem:[#allocation5 + $0x104] sm:$0xf0]  ;;  %v901_v25 = vld [vmem:[#allocation5 + $0x180] sm:$0xf]  ;;  %v767_v29 = vld [vmem:[#allocation5 + $0x78] sm:$0xf0]  ;;  %v774_v37 = vor.u32 %v980_v20, %v773_v19 }
  0x2b   :  { %530 = vmatpush.bf16.msra.mxu3 %v926_v62  ;;  %v1012_v27 = vld [vmem:[#allocation5 + $0x184] sm:$0xf0]  ;;  %v993_v30 = vld [vmem:[#allocation5 + $0xf4] sm:$0xf]  ;;  %v831_v31 = vld [vmem:[#allocation5 + $0xf8] sm:$0xf0]  ;;  %v838_v38 = vor.u32 %v996_v24, %v837_v23  ;;  %v770_v44 = vor.u32 %v977_v28, %v767_v29 }
  0x2c   :  { %489 = vmatpush.bf16.msra.mxu0 %v726_v4  ;;  %v1009_v32 = vld [vmem:[#allocation5 + $0x174] sm:$0xf]  ;;  %v895_v34 = vld [vmem:[#allocation5 + $0x178] sm:$0xf0]  ;;  %v975_v39 = vld [vmem:[#allocation5 + $0x64] sm:$0xf]  ;;  %v902_v43 = vor.u32 %v1012_v27, %v901_v25  ;;  %v834_v49 = vor.u32 %v993_v30, %v831_v31 }
  0x2d   :  { %503 = vmatpush.bf16.msra.mxu1 %v790_v5  ;;  %v1025_v35 = vld [vmem:[#allocation5 + $0x1f4] sm:$0xf]  ;;  %v959_v36 = vld [vmem:[#allocation5 + $0x1f8] sm:$0xf0]  ;;  %v759_v40 = vld [vmem:[#allocation5 + $0x68] sm:$0xf0]  ;;  %v898_v50 = vor.u32 %v1009_v32, %v895_v34 }
  0x2e   :  { %517 = vmatpush.bf16.msra.mxu2 %v854_v6  ;;  %v84_v41 = vld [vmem:[#allocation2 + $0x10] sm:$0xff]  ;;  %v991_v45 = vld [vmem:[#allocation5 + $0xe4] sm:$0xf]  ;;  %v823_v46 = vld [vmem:[#allocation5 + $0xe8] sm:$0xf0]  ;;  %v962_v54 = vor.u32 %v1025_v35, %v959_v36  ;;  %v762_v63 = vor.u32 %v975_v39, %v759_v40 }
  0x2f   :  { %531 = vmatpush.bf16.msra.mxu3 %v918_v10  ;;  %v88_v42 = vld [vmem:[#allocation2 + $0x30] sm:$0xff]  ;;  %v1007_v47 = vld [vmem:[#allocation5 + $0x164] sm:$0xf]  ;;  %v887_v48 = vld [vmem:[#allocation5 + $0x168] sm:$0xf0]  ;;  %v826_v1 = vor.u32 %v991_v45, %v823_v46 }
  0x30   :  { %490 = vmatpush.bf16.msra.mxu0 %v718_v17  ;;  %v82_v51 = vld [vmem:[#allocation2] sm:$0xff]  ;;  %v85_v53 = vld [vmem:[#allocation2 + $0x18] sm:$0xff]  ;;  %v1257_v55 = vpack.c.bf16 %v88_v42, %v84_v41  ;;  %v83_v57 = vld [vmem:[#allocation2 + $0x8] sm:$0xff]  ;;  %v890_v2 = vor.u32 %v1007_v47, %v887_v48 }
  0x31   :  { %504 = vmatpush.bf16.msra.mxu1 %v782_v21  ;;  %v86_v52 = vld [vmem:[#allocation2 + $0x20] sm:$0xff]  ;;  %v89_v56 = vld [vmem:[#allocation2 + $0x38] sm:$0xff]  ;;  %v87_v58 = vld [vmem:[#allocation2 + $0x28] sm:$0xff] }
  0x32   :  { %518 = vmatpush.bf16.msra.mxu2 %v846_v22  ;;  %v1023_v59 = vld [vmem:[#allocation5 + $0x1e4] sm:$0xf]  ;;  %v951_v60 = vld [vmem:[#allocation5 + $0x1e8] sm:$0xf0]  ;;  %v1259_v61 = vpack.c.bf16 %v86_v52, %v82_v51  ;;  %v1261_v62 = vpack.c.bf16 %v89_v56, %v85_v53  ;;  %v1263_v0 = vpack.c.bf16 %v87_v58, %v83_v57  ;;  %v973_v3 = vld [vmem:[#allocation5 + $0x54] sm:$0xf] }
  0x33   :  { %532 = vmatpush.bf16.msra.mxu3 %v910_v26  ;;  %v751_v4 = vld [vmem:[#allocation5 + $0x58] sm:$0xf0]  ;;  %v989_v5 = vld [vmem:[#allocation5 + $0xd4] sm:$0xf]  ;;  %v954_v6 = vor.u32 %v1023_v59, %v951_v60  ;;  %v971_v15 = vld [vmem:[#allocation5 + $0x44] sm:$0xf] }
  0x34   :  { %491 = vmatpush.bf16.msra.mxu0 %v710_v33  ;;  %v815_v7 = vld [vmem:[#allocation5 + $0xd8] sm:$0xf0]  ;;  %v1005_v8 = vld [vmem:[#allocation5 + $0x154] sm:$0xf]  ;;  %v754_v12 = vor.u32 %v973_v3, %v751_v4  ;;  %v743_v16 = vld [vmem:[#allocation5 + $0x48] sm:$0xf0] }
  0x35   :  { %505 = vmatpush.bf16.msra.mxu1 %v774_v37  ;;  %v879_v9 = vld [vmem:[#allocation5 + $0x158] sm:$0xf0]  ;;  %v1021_v10 = vld [vmem:[#allocation5 + $0x1d4] sm:$0xf]  ;;  %v818_v13 = vor.u32 %v989_v5, %v815_v7  ;;  %v987_v17 = vld [vmem:[#allocation5 + $0xc4] sm:$0xf]  ;;  %v746_v24 = vor.u32 %v971_v15, %v743_v16 }
  0x36   :  { %519 = vmatpush.bf16.msra.mxu2 %v838_v38  ;;  %v943_v11 = vld [vmem:[#allocation5 + $0x1d8] sm:$0xf0]  ;;  %v882_v14 = vor.u32 %v1005_v8, %v879_v9  ;;  %v807_v19 = vld [vmem:[#allocation5 + $0xc8] sm:$0xf0]  ;;  %v1003_v20 = vld [vmem:[#allocation5 + $0x144] sm:$0xf] }
  0x37   :  { %533 = vmatpush.bf16.msra.mxu3 %v902_v43  ;;  %492 = vmatmul.bf16.vlgmr.msra.gmra.mxu0 %v1259_v61  ;;  %v946_v18 = vor.u32 %v1021_v10, %v943_v11  ;;  %v871_v21 = vld [vmem:[#allocation5 + $0x148] sm:$0xf0]  ;;  %v1019_v22 = vld [vmem:[#allocation5 + $0x1c4] sm:$0xf]  ;;  %v810_v25 = vor.u32 %v987_v17, %v807_v19  ;;  %v969_v27 = vld [vmem:[#allocation5 + $0x34] sm:$0xf] }
  0x38   :  { %540 = vmatpush.bf16.msrb.mxu0 %v770_v44  ;;  %506 = vmatmul.bf16.vlgmr.msra.gmra.mxu1 %v1263_v0  ;;  %v935_v23 = vld [vmem:[#allocation5 + $0x1c8] sm:$0xf0]  ;;  %v874_v26 = vor.u32 %v1003_v20, %v871_v21  ;;  %v735_v28 = vld [vmem:[#allocation5 + $0x38] sm:$0xf0]  ;;  %v985_v29 = vld [vmem:[#allocation5 + $0xb4] sm:$0xf] }
  0x39   :  { %554 = vmatpush.bf16.msrb.mxu1 %v834_v49  ;;  %520 = vmatmul.bf16.vlgmr.msra.gmra.mxu2 %v1257_v55  ;;  %v938_v30 = vor.u32 %v1019_v22, %v935_v23  ;;  %v799_v31 = vld [vmem:[#allocation5 + $0xb8] sm:$0xf0]  ;;  %v1001_v32 = vld [vmem:[#allocation5 + $0x134] sm:$0xf]  ;;  %v738_v36 = vor.u32 %v969_v27, %v735_v28  ;;  %v967_v37 = vld [vmem:[#allocation5 + $0x24] sm:$0xf] }
  0x3a   :  { %568 = vmatpush.bf16.msrb.mxu2 %v898_v50  ;;  %534 = vmatmul.bf16.vlgmr.msra.gmra.mxu3 %v1261_v62  ;;  %v863_v33 = vld [vmem:[#allocation5 + $0x138] sm:$0xf0]  ;;  %v1017_v34 = vld [vmem:[#allocation5 + $0x1b4] sm:$0xf]  ;;  %v802_v38 = vor.u32 %v985_v29, %v799_v31  ;;  %v727_v40 = vld [vmem:[#allocation5 + $0x28] sm:$0xf0] }
  0x3b   :  { %582 = vmatpush.bf16.msrb.mxu3 %v962_v54  ;;  %v927_v35 = vld [vmem:[#allocation5 + $0x1b8] sm:$0xf0]  ;;  %v866_v39 = vor.u32 %v1001_v32, %v863_v33  ;;  %v983_v41 = vld [vmem:[#allocation5 + $0xa4] sm:$0xf]  ;;  %v791_v42 = vld [vmem:[#allocation5 + $0xa8] sm:$0xf0]  ;;  %v730_v48 = vor.u32 %v967_v37, %v727_v40 }
  0x3c   :  { %541 = vmatpush.bf16.msrb.mxu0 %v762_v63  ;;  %v930_v43 = vor.u32 %v1017_v34, %v927_v35  ;;  %v999_v44 = vld [vmem:[#allocation5 + $0x124] sm:$0xf]  ;;  %v855_v45 = vld [vmem:[#allocation5 + $0x128] sm:$0xf0]  ;;  %v794_v49 = vor.u32 %v983_v41, %v791_v42  ;;  %v965_v51 = vld [vmem:[#allocation5 + $0x14] sm:$0xf] }
  0x3d   :  { %555 = vmatpush.bf16.msrb.mxu1 %v826_v1  ;;  %v1015_v46 = vld [vmem:[#allocation5 + $0x1a4] sm:$0xf]  ;;  %v919_v47 = vld [vmem:[#allocation5 + $0x1a8] sm:$0xf0]  ;;  %v858_v50 = vor.u32 %v999_v44, %v855_v45  ;;  %v719_v52 = vld [vmem:[#allocation5 + $0x18] sm:$0xf0] }
  0x3e   :  { %569 = vmatpush.bf16.msrb.mxu2 %v890_v2  ;;  %v981_v53 = vld [vmem:[#allocation5 + $0x94] sm:$0xf]  ;;  %v922_v54 = vor.u32 %v1015_v46, %v919_v47  ;;  %v783_v56 = vld [vmem:[#allocation5 + $0x98] sm:$0xf0]  ;;  %v722_v63 = vor.u32 %v965_v51, %v719_v52  ;;  %v963_v3 = vld [vmem:[#allocation5 + $0x4] sm:$0xf] }
  0x3f   :  { %583 = vmatpush.bf16.msrb.mxu3 %v954_v6  ;;  %v997_v57 = vld [vmem:[#allocation5 + $0x114] sm:$0xf]  ;;  %v847_v58 = vld [vmem:[#allocation5 + $0x118] sm:$0xf0]  ;;  %v786_v1 = vor.u32 %v981_v53, %v783_v56  ;;  %v711_v4 = vld [vmem:[#allocation5 + $0x8] sm:$0xf0] }
  0x40   :  { %542 = vmatpush.bf16.msrb.mxu0 %v754_v12  ;;  %v1013_v59 = vld [vmem:[#allocation5 + $0x194] sm:$0xf]  ;;  %v911_v60 = vld [vmem:[#allocation5 + $0x198] sm:$0xf0]  ;;  %v850_v2 = vor.u32 %v997_v57, %v847_v58  ;;  %v979_v5 = vld [vmem:[#allocation5 + $0x84] sm:$0xf]  ;;  %v714_v12 = vor.u32 %v963_v3, %v711_v4 }
  0x41   :  { %556 = vmatpush.bf16.msrb.mxu1 %v818_v13  ;;  %v914_v6 = vor.u32 %v1013_v59, %v911_v60  ;;  %v775_v7 = vld [vmem:[#allocation5 + $0x88] sm:$0xf0]  ;;  %v995_v8 = vld [vmem:[#allocation5 + $0x104] sm:$0xf]  ;;  %v615_v16 = vld [vmem:[#allocation8 + $0x78] sm:$0xff] }
  0x42   :  { %570 = vmatpush.bf16.msrb.mxu2 %v882_v14  ;;  %v839_v9 = vld [vmem:[#allocation5 + $0x108] sm:$0xf0]  ;;  %v1011_v10 = vld [vmem:[#allocation5 + $0x184] sm:$0xf]  ;;  %v778_v13 = vor.u32 %v979_v5, %v775_v7  ;;  %v614_v17 = vld [vmem:[#allocation8 + $0x70] sm:$0xff] }
  0x43   :  { %584 = vmatpush.bf16.msrb.mxu3 %v946_v18  ;;  %v903_v11 = vld [vmem:[#allocation5 + $0x188] sm:$0xf0]  ;;  %v842_v14 = vor.u32 %v995_v8, %v839_v9  ;;  %v612_v19 = vld [vmem:[#allocation8 + $0x60] sm:$0xff]  ;;  %v611_v20 = vld [vmem:[#allocation8 + $0x58] sm:$0xff] }
  0x44   :  { %543 = vmatpush.bf16.msrb.mxu0 %v746_v24  ;;  %v906_v15 = vor.u32 %v1011_v10, %v903_v11  ;;  %v613_v18 = vld [vmem:[#allocation8 + $0x68] sm:$0xff]  ;;  %v610_v21 = vld [vmem:[#allocation8 + $0x50] sm:$0xff]  ;;  %v628_v27 = vld [vmem:[#allocation8 + $0xe0] sm:$0xff] }
  0x45   :  { %557 = vmatpush.bf16.msrb.mxu1 %v810_v25  ;;  %v606_v22 = vld [vmem:[#allocation8 + $0x30] sm:$0xff]  ;;  %v605_v24 = vld [vmem:[#allocation8 + $0x28] sm:$0xff]  ;;  %v603_v28 = vld [vmem:[#allocation8 + $0x18] sm:$0xff] }
  0x46   :  { %571 = vmatpush.bf16.msrb.mxu2 %v874_v26  ;;  %v630_v23 = vld [vmem:[#allocation8 + $0xf0] sm:$0xff]  ;;  %v629_v25 = vld [vmem:[#allocation8 + $0xe8] sm:$0xff]  ;;  %v604_v26 = vld [vmem:[#allocation8 + $0x20] sm:$0xff] }
  0x47   :  { %585 = vmatpush.bf16.msrb.mxu3 %v938_v30  ;;  %v627_v29 = vld [vmem:[#allocation8 + $0xd8] sm:$0xff]  ;;  %v602_v30 = vld [vmem:[#allocation8 + $0x10] sm:$0xff]  ;;  %v601_v32 = vld [vmem:[#allocation8 + $0x8] sm:$0xff] }
  0x48   :  { %544 = vmatpush.bf16.msrb.mxu0 %v738_v36  ;;  %v626_v31 = vld [vmem:[#allocation8 + $0xd0] sm:$0xff]  ;;  %v625_v33 = vld [vmem:[#allocation8 + $0xc8] sm:$0xff]  ;;  %v600_v34 = vld [vmem:[#allocation8] sm:$0xff] }
  0x49   :  { %558 = vmatpush.bf16.msrb.mxu1 %v802_v38  ;;  %v624_v35 = vld [vmem:[#allocation8 + $0xc0] sm:$0xff]  ;;  %v623_v36 = vld [vmem:[#allocation8 + $0xb8] sm:$0xff]  ;;  %v621_v40 = vld [vmem:[#allocation8 + $0xa8] sm:$0xff] }
  0x4a   :  { %572 = vmatpush.bf16.msrb.mxu2 %v866_v39  ;;  %v158_v37 = vld [vmem:[#allocation7] sm:$0x3]  ;;  %v622_v39 = vld [vmem:[#allocation8 + $0xb0] sm:$0xff]  ;;  %v620_v41 = vld [vmem:[#allocation8 + $0xa0] sm:$0xff] }
  0x4b   :  { %586 = vmatpush.bf16.msrb.mxu3 %v930_v43  ;;  %v160_v38 = vperm.slane %v158_v37, 0  ;;  %v619_v46 = vld [vmem:[#allocation8 + $0x98] sm:$0xff]  ;;  %v617_v51 = vld [vmem:[#allocation8 + $0x88] sm:$0xff]  ;;  %v161_v4 = vperm.slane %v158_v37, 1 }
  0x4c   :  { %545 = vmatpush.bf16.msrb.mxu0 %v730_v48  ;;  %v618_v48 = vld [vmem:[#allocation8 + $0x90] sm:$0xff] }
  0x4d   :  { %559 = vmatpush.bf16.msrb.mxu1 %v794_v49 }
  0x4e   :  { %573 = vmatpush.bf16.msrb.mxu2 %v858_v50 }
  0x4f   :  { %587 = vmatpush.bf16.msrb.mxu3 %v922_v54  ;;  %v616_v54 = vld [vmem:[#allocation8 + $0x80] sm:$0xff] }
  0x50   :  { %546 = vmatpush.bf16.msrb.mxu0 %v722_v63 }
  0x51   :  { %560 = vmatpush.bf16.msrb.mxu1 %v786_v1 }
  0x52   :  { %574 = vmatpush.bf16.msrb.mxu2 %v850_v2 }
  0x53   :  { %588 = vmatpush.bf16.msrb.mxu3 %v914_v6 }
  0x54   :  { %547 = vmatpush.bf16.msrb.mxu0 %v714_v12 }
  0x55   :  { %561 = vmatpush.bf16.msrb.mxu1 %v778_v13 }
  0x56   :  { %575 = vmatpush.bf16.msrb.mxu2 %v842_v14 }
  0x57   :  { %589 = vmatpush.bf16.msrb.mxu3 %v906_v15  ;;  %548 = vmatmul.bf16.vlgmr.msrb.gmra.mxu0 %v1259_v61  ;;  %v609_v61 = vld [vmem:[#allocation8 + $0x48] sm:$0xff] }
  0x58   :  { %636 = vmatpush.msra.mxu0 %v615_v16  ;;  %562 = vmatmul.bf16.vlgmr.msrb.gmra.mxu1 %v1263_v0  ;;  %v631_v0 = vld [vmem:[#allocation8 + $0xf8] sm:$0xff] }
  0x59   :  { %576 = vmatmul.bf16.vlgmr.msrb.gmra.mxu2 %v1257_v55  ;;  %v608_v55 = vld [vmem:[#allocation8 + $0x40] sm:$0xff]  ;;  %659 = vmatpush.msra.mxu1 %v631_v0 }
  0x5a   :  { %1032 = vmatpush.msra.mxu2 %v615_v16  ;;  %590 = vmatmul.bf16.vlgmr.msrb.gmra.mxu3 %v1261_v62  ;;  %v607_v62 = vld [vmem:[#allocation8 + $0x38] sm:$0xff] }
  0x5b   :  { %637 = vmatpush.msra.mxu0 %v614_v17  ;;  %1048 = vmatpush.msra.mxu3 %v631_v0 }
  0x5c   :  { %1033 = vmatpush.msra.mxu2 %v614_v17  ;;  %660 = vmatpush.msra.mxu1 %v630_v23 }
  0x5d   :  { %638 = vmatpush.msra.mxu0 %v613_v18  ;;  %1049 = vmatpush.msra.mxu3 %v630_v23 }
  0x5e   :  { %1034 = vmatpush.msra.mxu2 %v613_v18  ;;  %661 = vmatpush.msra.mxu1 %v629_v25 }
  0x5f   :  { %639 = vmatpush.msra.mxu0 %v612_v19  ;;  %1050 = vmatpush.msra.mxu3 %v629_v25 }
  0x60   :  { %1035 = vmatpush.msra.mxu2 %v612_v19  ;;  %662 = vmatpush.msra.mxu1 %v628_v27 }
  0x61   :  { %640 = vmatpush.msra.mxu0 %v611_v20  ;;  %1051 = vmatpush.msra.mxu3 %v628_v27 }
  0x62   :  { %1036 = vmatpush.msra.mxu2 %v611_v20  ;;  %663 = vmatpush.msra.mxu1 %v627_v29 }
  0x63   :  { %641 = vmatpush.msra.mxu0 %v610_v21  ;;  %1052 = vmatpush.msra.mxu3 %v627_v29 }
  0x64   :  { %1037 = vmatpush.msra.mxu2 %v610_v21  ;;  %664 = vmatpush.msra.mxu1 %v626_v31 }
  0x65   :  { %642 = vmatpush.msra.mxu0 %v609_v61  ;;  %1053 = vmatpush.msra.mxu3 %v626_v31 }
  0x66   :  { %1038 = vmatpush.msra.mxu2 %v609_v61  ;;  %665 = vmatpush.msra.mxu1 %v625_v33 }
  0x67   :  { %643 = vmatpush.msra.mxu0 %v608_v55  ;;  %1054 = vmatpush.msra.mxu3 %v625_v33 }
  0x68   :  { %1039 = vmatpush.msra.mxu2 %v608_v55  ;;  %666 = vmatpush.msra.mxu1 %v624_v35  ;;  %v1075_v55 = vld [vmem:[%s1283_s4] ss:$0 sm:$0xff] }
  0x69   :  { %644 = vmatpush.msra.mxu0 %v607_v62  ;;  %1055 = vmatpush.msra.mxu3 %v624_v35 }
  0x6a   :  { %1040 = vmatpush.msra.mxu2 %v607_v62  ;;  %667 = vmatpush.msra.mxu1 %v623_v36 }
  0x6b   :  { %645 = vmatpush.msra.mxu0 %v606_v22  ;;  %1056 = vmatpush.msra.mxu3 %v623_v36 }
  0x6c   :  { %1041 = vmatpush.msra.mxu2 %v606_v22  ;;  %668 = vmatpush.msra.mxu1 %v622_v39 }
  0x6d   :  { %646 = vmatpush.msra.mxu0 %v605_v24  ;;  %1057 = vmatpush.msra.mxu3 %v622_v39 }
  0x6e   :  { %1042 = vmatpush.msra.mxu2 %v605_v24  ;;  %669 = vmatpush.msra.mxu1 %v621_v40 }
  0x6f   :  { %647 = vmatpush.msra.mxu0 %v604_v26  ;;  %1058 = vmatpush.msra.mxu3 %v621_v40 }
  0x70   :  { %1043 = vmatpush.msra.mxu2 %v604_v26  ;;  %670 = vmatpush.msra.mxu1 %v620_v41 }
  0x71   :  { %648 = vmatpush.msra.mxu0 %v603_v28  ;;  %1059 = vmatpush.msra.mxu3 %v620_v41 }
  0x72   :  { %1044 = vmatpush.msra.mxu2 %v603_v28  ;;  %671 = vmatpush.msra.mxu1 %v619_v46 }
  0x73   :  { %649 = vmatpush.msra.mxu0 %v602_v30  ;;  %1060 = vmatpush.msra.mxu3 %v619_v46 }
  0x74   :  { %1045 = vmatpush.msra.mxu2 %v602_v30  ;;  %672 = vmatpush.msra.mxu1 %v618_v48 }
  0x75   :  { %650 = vmatpush.msra.mxu0 %v601_v32  ;;  %1061 = vmatpush.msra.mxu3 %v618_v48 }
  0x76   :  { %1046 = vmatpush.msra.mxu2 %v601_v32  ;;  %673 = vmatpush.msra.mxu1 %v617_v51 }
  0x77   :  { %651 = vmatpush.msra.mxu0 %v600_v34  ;;  %1062 = vmatpush.msra.mxu3 %v617_v51 }
  0x78   :  { %1047 = vmatpush.msra.mxu2 %v600_v34  ;;  %674 = vmatpush.msra.mxu1 %v616_v54 }
  0x79   :  { %1063 = vmatpush.msra.mxu3 %v616_v54 }
  0xb4   :  { %v493_v42 = vpop.f32.mrf.mxu0 }
  0xb5   :  { %v494_v43 = vadd.f32 %v493_v42, %v160_v38  ;;  %v507_v44 = vpop.f32.mrf.mxu1 }
  0xb7   :  { %v508_v45 = vadd.f32 %v507_v44, %v494_v43 }
  0xbc   :  { %v521_v47 = vpop.f32.mrf.mxu2  ;;  %v495_v53 = vpop.f32.mrf.mxu0 }
  0xbd   :  { %v522_v49 = vadd.f32 %v521_v47, %v508_v45  ;;  %v535_v50 = vpop.f32.mrf.mxu3  ;;  %v496_v56 = vadd.f32 %v495_v53, %v160_v38  ;;  %v509_v57 = vpop.f32.mrf.mxu1 }
  0xbf   :  { %v536_v52 = vadd.f32 %v535_v50, %v522_v49  ;;  %v510_v59 = vadd.f32 %v509_v57, %v496_v56 }
  0xc1   :  { %v596_v58 = vmax.f32 %v536_v52, 0.0 }
  0xc3   :  { %652 = vmatmul.f32.vlgmr.msra.gmra.mxu0 %v596_v58 }
  0xc4   :  { %v523_v60 = vpop.f32.mrf.mxu2 }
  0xc5   :  { %v524_v63 = vadd.f32 %v523_v60, %v510_v59  ;;  %v537_v1 = vpop.f32.mrf.mxu3 }
  0xc7   :  { %v538_v2 = vadd.f32 %v537_v1, %v524_v63 }
  0xc9   :  { %v598_v3 = vmax.f32 %v538_v2, 0.0 }
  0xcb   :  { %655 = vmatmul.f32.vlgmr.msra.gmra.mxu2 %v598_v3 }
  0xd4   :  { %v549_v5 = vpop.f32.mrf.mxu0 }
  0xd5   :  { %v550_v6 = vadd.f32 %v549_v5, %v161_v4  ;;  %v563_v7 = vpop.f32.mrf.mxu1 }
  0xd7   :  { %v564_v8 = vadd.f32 %v563_v7, %v550_v6 }
  0xdc   :  { %v577_v9 = vpop.f32.mrf.mxu2  ;;  %v551_v12 = vpop.f32.mrf.mxu0 }
  0xdd   :  { %v578_v10 = vadd.f32 %v577_v9, %v564_v8  ;;  %v591_v11 = vpop.f32.mrf.mxu3  ;;  %v552_v14 = vadd.f32 %v551_v12, %v161_v4  ;;  %v565_v16 = vpop.f32.mrf.mxu1 }
  0xdf   :  { %v592_v13 = vadd.f32 %v591_v11, %v578_v10  ;;  %v566_v17 = vadd.f32 %v565_v16, %v552_v14 }
  0xe1   :  { %v597_v15 = vmax.f32 %v592_v13, 0.0 }
  0xe3   :  { %675 = vmatmul.f32.vlgmr.msra.gmra.mxu1 %v597_v15 }
  0xe4   :  { %v579_v18 = vpop.f32.mrf.mxu2 }
  0xe5   :  { %v580_v19 = vadd.f32 %v579_v18, %v566_v17  ;;  %v593_v20 = vpop.f32.mrf.mxu3 }
  0xe7   :  { %v594_v21 = vadd.f32 %v593_v20, %v580_v19 }
  0xe9   :  { %v599_v61 = vmax.f32 %v594_v21, 0.0 }
  0xeb   :  { %678 = vmatmul.f32.vlgmr.msra.gmra.mxu3 %v599_v61 }
 0x140   :  { %v653_v62 = vpop.f32.mrf.mxu0 }
 0x141   :  { %v654_v23 = vadd.f32 %v1075_v55, %v653_v62 }
 0x14e   :  { %v656_v0 = vpop.f32.mrf.mxu2 }
 0x14f   :  { %v657_v24 = vadd.f32 %v1075_v55, %v656_v0 }
 0x160   :  { %v676_v22 = vpop.f32.mrf.mxu1 }
 0x161   :  { %v677_v26 = vadd.f32 %v676_v22, %v654_v23 }
 0x16e   :  { %v679_v25 = vpop.f32.mrf.mxu3 }
 0x16f   :  { %v680_v27 = vadd.f32 %v679_v25, %v657_v24 }
 0x171   :  { %v1030_v28 = vpack.c.bf16 %v680_v27, %v677_v26 }
 0x173   :  { %1031 = vst [vmem:[#allocation10] sm:$0xff] %v1030_v28  }
 0x174   :  { %689 = vsyncadd [#allocation4], 64  ;;  %s692_s17 = sshll.u32 %s1284_s5, 4  ;;  %s1212_s18 = smov [#allocation10]   ;;  %s693_s17 = int_to_ptr.hbm [resolvable:$true] %s692_s17 }
 0x175   :  { %s690_s19 = sshll.u32 %s1212_s18, 4  ;;  %s1213_s4 = smov 64   ;;  %s691_s19 = int_to_ptr.vmem [resolvable:$true] %s690_s19 }
 0x176   :  { %s1214_s20 = smov 4  }
 0x177   :  { %698 = dma.vmem_to_hbm [thread:$0]  %s691_s19, 64, %s693_s17, [#allocation4], %s1213_s4, %s1213_s4, %s1214_s20  }
 0x178   :  { %1202 = dma.done.wait [#allocation4], 128  }
 0x179   :  { %1203 = vsyncadd [#allocation4], 4294967168 }
 0x17a   :  { %703 = vsyncpa [#allocation3], 1 }
 0x17b   :  { %704 = vsyncpa [#allocation6], 1 }
 0x17c   :  { %705 = vsyncpa [#allocation9], 1 }
 0x17d   :  { %706 = vsyncpa [#allocation4], 1 }

</bundles_post_ra>
